<compile_context>
chip_gen: v7x
topology: tpu7x:2x2x1
jax: 0.10.0
libtpu: 0.0.40
codegen_flags: <defaults>
</compile_context>

<pallas_src>
import functools

import jax
import jax.numpy as jnp
from jax import lax
from jax.experimental import pallas as pl
from jax.experimental.pallas import tpu as pltpu


def _round_up(n, m):
    return ((n + m - 1) // m) * m


def _embed_gather_kernel(idx_ref, tbl_hbm, out_ref, sems, *, tokens_per_tile, n_sems):
    """Gather `tokens_per_tile` embedding rows HBM -> output VMEM block.

    idx_ref : SMEM (padded_tokens,) int32   -- scalar-prefetched token ids
    tbl_hbm : HBM  (vocab, ebd_dim)         -- raw ref (memory_space=pl.ANY)
    out_ref : VMEM (tokens_per_tile, ebd_dim) output block
    sems    : DMA semaphores, shape (n_sems,)
    """
    base = pl.program_id(0) * tokens_per_tile

    def row_copy(t):
        # `t` may be a Python int or a traced int32.
        row = idx_ref[base + t]
        return pltpu.make_async_copy(
            tbl_hbm.at[pl.ds(row, 1), :],     # (1, ebd_dim) source row in HBM
            out_ref.at[pl.ds(t, 1), :],       # (1, ebd_dim) dest row in the output block
            sems.at[t % n_sems],
        )

    # Prime the pipeline: n_sems row fetches in flight.
    for t in range(n_sems):
        row_copy(t).start()

    # Steady state: retire the oldest outstanding fetch, then issue the next,
    # keeping exactly n_sems DMAs in flight to hide HBM latency.
    def body(t, carry):
        row_copy(t - n_sems).wait()
        row_copy(t).start()
        return carry

    lax.fori_loop(n_sems, tokens_per_tile, body, 0)

    # Drain the tail window.
    for t in range(tokens_per_tile - n_sems, tokens_per_tile):
        row_copy(t).wait()


def pre_embedding(pre_w2v, x, *, tokens_per_tile=256, n_sems=8):
    """Equivalent of PreEmbedding.forward: embedding lookup pre_w2v[x]."""
    vocab_size, ebd_dim = pre_w2v.shape
    orig_shape = x.shape

    idx = x.reshape(-1).astype(jnp.int32)
    # Manual DMA source addressing has no runtime bounds check -> clamp.
    idx = jnp.clip(idx, 0, vocab_size - 1)
    n_tokens = idx.shape[0]

    # Tokens per grid step: multiple of 8 (sublane-dense output block), capped.
    tile = min(tokens_per_tile, _round_up(n_tokens, 8))
    tile = max(8, _round_up(tile, 8))
    k_sems = max(1, min(n_sems, tile))

    padded = _round_up(n_tokens, tile)
    if padded != n_tokens:
        idx = jnp.pad(idx, (0, padded - n_tokens))  # pad with index 0 (valid row)

    kernel = functools.partial(
        _embed_gather_kernel, tokens_per_tile=tile, n_sems=k_sems
    )

    out_flat = pl.pallas_call(
        kernel,
        out_shape=jax.ShapeDtypeStruct((padded, ebd_dim), pre_w2v.dtype),
        grid_spec=pltpu.PrefetchScalarGridSpec(
            num_scalar_prefetch=1,                    # idx -> SMEM before the grid runs
            grid=(padded // tile,),
            in_specs=[pl.BlockSpec(memory_space=pl.ANY)],   # table stays in HBM
            out_specs=pl.BlockSpec((tile, ebd_dim), lambda i, idx_ref: (i, 0)),
            scratch_shapes=[pltpu.SemaphoreType.DMA((k_sems,))],
        ),
        compiler_params=pltpu.CompilerParams(
            dimension_semantics=("parallel",),        # disjoint output tiles per step
        ),
    )(idx, pre_w2v)

    return out_flat[:n_tokens].reshape(*orig_shape, ebd_dim)


if __name__ == "__main__":
    # Small, deterministic setup consistent with the module's __init__:
    # pre_w2v is a (vocab_size, ebd_dim) pretrained matrix (synthetic here).
    vocab_size = 64
    ebd_dim = 128
    batch, seq = 2, 8

    key = jax.random.PRNGKey(0)
    k_w, k_x = jax.random.split(key)
    pre_w2v = jax.random.normal(k_w, (vocab_size, ebd_dim), dtype=jnp.float32)
    x = jax.random.randint(k_x, (batch, seq), 0, vocab_size, dtype=jnp.int32)

    out = pre_embedding(pre_w2v, x)
    out = jax.block_until_ready(out)

    ref = jnp.take(pre_w2v, x, axis=0)
    assert out.shape == (batch, seq, ebd_dim), out.shape
    assert out.dtype == jnp.float32, out.dtype
    assert jnp.array_equal(out, ref), "Pallas embedding lookup mismatch"

    # Second case exercises padding + multi-tile grid (15 tokens, tile=8 -> 2 steps).
    x2 = jax.random.randint(jax.random.PRNGKey(1), (3, 5), 0, vocab_size, dtype=jnp.int32)
    out2 = jax.block_until_ready(pre_embedding(pre_w2v, x2, tokens_per_tile=8))
    ref2 = jnp.take(pre_w2v, x2, axis=0)
    assert out2.shape == (3, 5, ebd_dim), out2.shape
    assert jnp.array_equal(out2, ref2), "Pallas embedding lookup mismatch (padded case)"

    print("KERNEL_OK")
</pallas_src>

<mosaic_0001>
module attributes {stable_mosaic.version = 11 : i64} {
  func.func @_embed_gather_kernel(%arg0: i32, %arg1: memref<16xi32, #tpu.memory_space<smem>>, %arg2: memref<64x128xf32, #tpu.memory_space<any>>, %arg3: memref<16x128xf32, #tpu.memory_space<vmem>>, %arg4: memref<8x!tpu.dma_semaphore, #tpu.memory_space<semaphore_mem>>) attributes {dimension_semantics = [#tpu.dimension_semantics<parallel>], iteration_bounds = array<i64: 1>, scalar_prefetch = 1 : i64, scratch_operands = 1 : i64, tpu.core_type = #tpu.core_type<tc>, window_params = [{}, {transform_indices = @transform_1, window_bounds = array<i64: 16, 128>}]} {
    %c16_i32 = arith.constant 16 : i32
    %0 = arith.muli %arg0, %c16_i32 : i32
    %c0_i32 = arith.constant 0 : i32
    %1 = arith.addi %0, %c0_i32 : i32
    %2 = arith.index_cast %1 : i32 to index
    %3 = memref.load %arg1[%2] : memref<16xi32, #tpu.memory_space<smem>>
    %c0_i32_0 = arith.constant 0 : i32
    %c0_i32_1 = arith.constant 0 : i32
    %4 = tpu.memref_slice %arg2[%3, %c0_i32_1] : memref<64x128xf32, #tpu.memory_space<any>> -> memref<1x128xf32, #tpu.memory_space<any>>
    %c0_i32_2 = arith.constant 0 : i32
    %c0_i32_3 = arith.constant 0 : i32
    %5 = tpu.memref_slice %arg3[%c0_i32_2, %c0_i32_3] : memref<16x128xf32, #tpu.memory_space<vmem>> -> memref<1x128xf32, #tpu.memory_space<vmem>>
    %6 = tpu.memref_slice %arg4[%c0_i32_0] : memref<8x!tpu.dma_semaphore, #tpu.memory_space<semaphore_mem>> -> memref<1x!tpu.dma_semaphore, #tpu.memory_space<semaphore_mem>>
    %7 = tpu.memref_squeeze %6 : memref<1x!tpu.dma_semaphore, #tpu.memory_space<semaphore_mem>> -> memref<!tpu.dma_semaphore, #tpu.memory_space<semaphore_mem>>
    tpu.enqueue_dma source(%4 : memref<1x128xf32, #tpu.memory_space<any>>) target(%5 : memref<1x128xf32, #tpu.memory_space<vmem>>) target_semaphore(%7 : memref<!tpu.dma_semaphore, #tpu.memory_space<semaphore_mem>>)
    %c1_i32 = arith.constant 1 : i32
    %8 = arith.addi %0, %c1_i32 : i32
    %9 = arith.index_cast %8 : i32 to index
    %10 = memref.load %arg1[%9] : memref<16xi32, #tpu.memory_space<smem>>
    %c1_i32_4 = arith.constant 1 : i32
    %c0_i32_5 = arith.constant 0 : i32
    %11 = tpu.memref_slice %arg2[%10, %c0_i32_5] : memref<64x128xf32, #tpu.memory_space<any>> -> memref<1x128xf32, #tpu.memory_space<any>>
    %c1_i32_6 = arith.constant 1 : i32
    %c0_i32_7 = arith.constant 0 : i32
    %12 = tpu.memref_slice %arg3[%c1_i32_6, %c0_i32_7] : memref<16x128xf32, #tpu.memory_space<vmem>> -> memref<1x128xf32, #tpu.memory_space<vmem>>
    %13 = tpu.memref_slice %arg4[%c1_i32_4] : memref<8x!tpu.dma_semaphore, #tpu.memory_space<semaphore_mem>> -> memref<1x!tpu.dma_semaphore, #tpu.memory_space<semaphore_mem>>
    %14 = tpu.memref_squeeze %13 : memref<1x!tpu.dma_semaphore, #tpu.memory_space<semaphore_mem>> -> memref<!tpu.dma_semaphore, #tpu.memory_space<semaphore_mem>>
    tpu.enqueue_dma source(%11 : memref<1x128xf32, #tpu.memory_space<any>>) target(%12 : memref<1x128xf32, #tpu.memory_space<vmem>>) target_semaphore(%14 : memref<!tpu.dma_semaphore, #tpu.memory_space<semaphore_mem>>)
    %c2_i32 = arith.constant 2 : i32
    %15 = arith.addi %0, %c2_i32 : i32
    %16 = arith.index_cast %15 : i32 to index
    %17 = memref.load %arg1[%16] : memref<16xi32, #tpu.memory_space<smem>>
    %c2_i32_8 = arith.constant 2 : i32
    %c0_i32_9 = arith.constant 0 : i32
    %18 = tpu.memref_slice %arg2[%17, %c0_i32_9] : memref<64x128xf32, #tpu.memory_space<any>> -> memref<1x128xf32, #tpu.memory_space<any>>
    %c2_i32_10 = arith.constant 2 : i32
    %c0_i32_11 = arith.constant 0 : i32
    %19 = tpu.memref_slice %arg3[%c2_i32_10, %c0_i32_11] : memref<16x128xf32, #tpu.memory_space<vmem>> -> memref<1x128xf32, #tpu.memory_space<vmem>>
    %20 = tpu.memref_slice %arg4[%c2_i32_8] : memref<8x!tpu.dma_semaphore, #tpu.memory_space<semaphore_mem>> -> memref<1x!tpu.dma_semaphore, #tpu.memory_space<semaphore_mem>>
    %21 = tpu.memref_squeeze %20 : memref<1x!tpu.dma_semaphore, #tpu.memory_space<semaphore_mem>> -> memref<!tpu.dma_semaphore, #tpu.memory_space<semaphore_mem>>
    tpu.enqueue_dma source(%18 : memref<1x128xf32, #tpu.memory_space<any>>) target(%19 : memref<1x128xf32, #tpu.memory_space<vmem>>) target_semaphore(%21 : memref<!tpu.dma_semaphore, #tpu.memory_space<semaphore_mem>>)
    %c3_i32 = arith.constant 3 : i32
    %22 = arith.addi %0, %c3_i32 : i32
    %23 = arith.index_cast %22 : i32 to index
    %24 = memref.load %arg1[%23] : memref<16xi32, #tpu.memory_space<smem>>
    %c3_i32_12 = arith.constant 3 : i32
    %c0_i32_13 = arith.constant 0 : i32
    %25 = tpu.memref_slice %arg2[%24, %c0_i32_13] : memref<64x128xf32, #tpu.memory_space<any>> -> memref<1x128xf32, #tpu.memory_space<any>>
    %c3_i32_14 = arith.constant 3 : i32
    %c0_i32_15 = arith.constant 0 : i32
    %26 = tpu.memref_slice %arg3[%c3_i32_14, %c0_i32_15] : memref<16x128xf32, #tpu.memory_space<vmem>> -> memref<1x128xf32, #tpu.memory_space<vmem>>
    %27 = tpu.memref_slice %arg4[%c3_i32_12] : memref<8x!tpu.dma_semaphore, #tpu.memory_space<semaphore_mem>> -> memref<1x!tpu.dma_semaphore, #tpu.memory_space<semaphore_mem>>
    %28 = tpu.memref_squeeze %27 : memref<1x!tpu.dma_semaphore, #tpu.memory_space<semaphore_mem>> -> memref<!tpu.dma_semaphore, #tpu.memory_space<semaphore_mem>>
    tpu.enqueue_dma source(%25 : memref<1x128xf32, #tpu.memory_space<any>>) target(%26 : memref<1x128xf32, #tpu.memory_space<vmem>>) target_semaphore(%28 : memref<!tpu.dma_semaphore, #tpu.memory_space<semaphore_mem>>)
    %c4_i32 = arith.constant 4 : i32
    %29 = arith.addi %0, %c4_i32 : i32
    %30 = arith.index_cast %29 : i32 to index
    %31 = memref.load %arg1[%30] : memref<16xi32, #tpu.memory_space<smem>>
    %c4_i32_16 = arith.constant 4 : i32
    %c0_i32_17 = arith.constant 0 : i32
    %32 = tpu.memref_slice %arg2[%31, %c0_i32_17] : memref<64x128xf32, #tpu.memory_space<any>> -> memref<1x128xf32, #tpu.memory_space<any>>
    %c4_i32_18 = arith.constant 4 : i32
    %c0_i32_19 = arith.constant 0 : i32
    %33 = tpu.memref_slice %arg3[%c4_i32_18, %c0_i32_19] : memref<16x128xf32, #tpu.memory_space<vmem>> -> memref<1x128xf32, #tpu.memory_space<vmem>>
    %34 = tpu.memref_slice %arg4[%c4_i32_16] : memref<8x!tpu.dma_semaphore, #tpu.memory_space<semaphore_mem>> -> memref<1x!tpu.dma_semaphore, #tpu.memory_space<semaphore_mem>>
    %35 = tpu.memref_squeeze %34 : memref<1x!tpu.dma_semaphore, #tpu.memory_space<semaphore_mem>> -> memref<!tpu.dma_semaphore, #tpu.memory_space<semaphore_mem>>
    tpu.enqueue_dma source(%32 : memref<1x128xf32, #tpu.memory_space<any>>) target(%33 : memref<1x128xf32, #tpu.memory_space<vmem>>) target_semaphore(%35 : memref<!tpu.dma_semaphore, #tpu.memory_space<semaphore_mem>>)
    %c5_i32 = arith.constant 5 : i32
    %36 = arith.addi %0, %c5_i32 : i32
    %37 = arith.index_cast %36 : i32 to index
    %38 = memref.load %arg1[%37] : memref<16xi32, #tpu.memory_space<smem>>
    %c5_i32_20 = arith.constant 5 : i32
    %c0_i32_21 = arith.constant 0 : i32
    %39 = tpu.memref_slice %arg2[%38, %c0_i32_21] : memref<64x128xf32, #tpu.memory_space<any>> -> memref<1x128xf32, #tpu.memory_space<any>>
    %c5_i32_22 = arith.constant 5 : i32
    %c0_i32_23 = arith.constant 0 : i32
    %40 = tpu.memref_slice %arg3[%c5_i32_22, %c0_i32_23] : memref<16x128xf32, #tpu.memory_space<vmem>> -> memref<1x128xf32, #tpu.memory_space<vmem>>
    %41 = tpu.memref_slice %arg4[%c5_i32_20] : memref<8x!tpu.dma_semaphore, #tpu.memory_space<semaphore_mem>> -> memref<1x!tpu.dma_semaphore, #tpu.memory_space<semaphore_mem>>
    %42 = tpu.memref_squeeze %41 : memref<1x!tpu.dma_semaphore, #tpu.memory_space<semaphore_mem>> -> memref<!tpu.dma_semaphore, #tpu.memory_space<semaphore_mem>>
    tpu.enqueue_dma source(%39 : memref<1x128xf32, #tpu.memory_space<any>>) target(%40 : memref<1x128xf32, #tpu.memory_space<vmem>>) target_semaphore(%42 : memref<!tpu.dma_semaphore, #tpu.memory_space<semaphore_mem>>)
    %c6_i32 = arith.constant 6 : i32
    %43 = arith.addi %0, %c6_i32 : i32
    %44 = arith.index_cast %43 : i32 to index
    %45 = memref.load %arg1[%44] : memref<16xi32, #tpu.memory_space<smem>>
    %c6_i32_24 = arith.constant 6 : i32
    %c0_i32_25 = arith.constant 0 : i32
    %46 = tpu.memref_slice %arg2[%45, %c0_i32_25] : memref<64x128xf32, #tpu.memory_space<any>> -> memref<1x128xf32, #tpu.memory_space<any>>
    %c6_i32_26 = arith.constant 6 : i32
    %c0_i32_27 = arith.constant 0 : i32
    %47 = tpu.memref_slice %arg3[%c6_i32_26, %c0_i32_27] : memref<16x128xf32, #tpu.memory_space<vmem>> -> memref<1x128xf32, #tpu.memory_space<vmem>>
    %48 = tpu.memref_slice %arg4[%c6_i32_24] : memref<8x!tpu.dma_semaphore, #tpu.memory_space<semaphore_mem>> -> memref<1x!tpu.dma_semaphore, #tpu.memory_space<semaphore_mem>>
    %49 = tpu.memref_squeeze %48 : memref<1x!tpu.dma_semaphore, #tpu.memory_space<semaphore_mem>> -> memref<!tpu.dma_semaphore, #tpu.memory_space<semaphore_mem>>
    tpu.enqueue_dma source(%46 : memref<1x128xf32, #tpu.memory_space<any>>) target(%47 : memref<1x128xf32, #tpu.memory_space<vmem>>) target_semaphore(%49 : memref<!tpu.dma_semaphore, #tpu.memory_space<semaphore_mem>>)
    %c7_i32 = arith.constant 7 : i32
    %50 = arith.addi %0, %c7_i32 : i32
    %51 = arith.index_cast %50 : i32 to index
    %52 = memref.load %arg1[%51] : memref<16xi32, #tpu.memory_space<smem>>
    %c7_i32_28 = arith.constant 7 : i32
    %c0_i32_29 = arith.constant 0 : i32
    %53 = tpu.memref_slice %arg2[%52, %c0_i32_29] : memref<64x128xf32, #tpu.memory_space<any>> -> memref<1x128xf32, #tpu.memory_space<any>>
    %c7_i32_30 = arith.constant 7 : i32
    %c0_i32_31 = arith.constant 0 : i32
    %54 = tpu.memref_slice %arg3[%c7_i32_30, %c0_i32_31] : memref<16x128xf32, #tpu.memory_space<vmem>> -> memref<1x128xf32, #tpu.memory_space<vmem>>
    %55 = tpu.memref_slice %arg4[%c7_i32_28] : memref<8x!tpu.dma_semaphore, #tpu.memory_space<semaphore_mem>> -> memref<1x!tpu.dma_semaphore, #tpu.memory_space<semaphore_mem>>
    %56 = tpu.memref_squeeze %55 : memref<1x!tpu.dma_semaphore, #tpu.memory_space<semaphore_mem>> -> memref<!tpu.dma_semaphore, #tpu.memory_space<semaphore_mem>>
    tpu.enqueue_dma source(%53 : memref<1x128xf32, #tpu.memory_space<any>>) target(%54 : memref<1x128xf32, #tpu.memory_space<vmem>>) target_semaphore(%56 : memref<!tpu.dma_semaphore, #tpu.memory_space<semaphore_mem>>)
    %c8_i32 = arith.constant 8 : i32
    %c8_i32_32 = arith.constant 8 : i32
    %57 = arith.addi %c8_i32, %c8_i32_32 : i32
    %c1_i32_33 = arith.constant 1 : i32
    scf.for %arg5 = %c8_i32 to %57 step %c1_i32_33  : i32 {
      %c8_i32_68 = arith.constant 8 : i32
      %114 = arith.subi %arg5, %c8_i32_68 : i32
      %115 = arith.addi %0, %114 : i32
      %116 = arith.index_cast %115 : i32 to index
      %117 = memref.load %arg1[%116] : memref<16xi32, #tpu.memory_space<smem>>
      %c8_i32_69 = arith.constant 8 : i32
      %c0_i32_70 = arith.constant 0 : i32
      %118 = arith.cmpi eq, %c8_i32_69, %c0_i32_70 : i32
      %c1_i32_71 = arith.constant 1 : i32
      %119 = arith.select %118, %c1_i32_71, %c8_i32_69 : i32
      %120 = arith.remsi %114, %119 : i32
      %c0_i32_72 = arith.constant 0 : i32
      %121 = arith.cmpi ne, %120, %c0_i32_72 : i32
      %c0_i32_73 = arith.constant 0 : i32
      %122 = arith.cmpi slt, %120, %c0_i32_73 : i32
      %c0_i32_74 = arith.constant 0 : i32
      %123 = arith.cmpi slt, %119, %c0_i32_74 : i32
      %124 = arith.xori %122, %123 : i1
      %125 = arith.andi %124, %121 : i1
      %126 = arith.addi %120, %119 : i32
      %127 = arith.select %125, %126, %120 : i32
      %c0_i32_75 = arith.constant 0 : i32
      %128 = tpu.memref_slice %arg2[%117, %c0_i32_75] : memref<64x128xf32, #tpu.memory_space<any>> -> memref<1x128xf32, #tpu.memory_space<any>>
      %c0_i32_76 = arith.constant 0 : i32
      %129 = tpu.memref_slice %arg3[%114, %c0_i32_76] : memref<16x128xf32, #tpu.memory_space<vmem>> -> memref<1x128xf32, #tpu.memory_space<vmem>>
      %130 = tpu.memref_slice %arg4[%127] : memref<8x!tpu.dma_semaphore, #tpu.memory_space<semaphore_mem>> -> memref<1x!tpu.dma_semaphore, #tpu.memory_space<semaphore_mem>>
      %131 = tpu.memref_squeeze %130 : memref<1x!tpu.dma_semaphore, #tpu.memory_space<semaphore_mem>> -> memref<!tpu.dma_semaphore, #tpu.memory_space<semaphore_mem>>
      tpu.wait_dma2 semaphore(%131 : memref<!tpu.dma_semaphore, #tpu.memory_space<semaphore_mem>>) src(%128 : memref<1x128xf32, #tpu.memory_space<any>>) dst(%129 : memref<1x128xf32, #tpu.memory_space<vmem>>)
      %132 = arith.addi %0, %arg5 : i32
      %133 = arith.index_cast %132 : i32 to index
      %134 = memref.load %arg1[%133] : memref<16xi32, #tpu.memory_space<smem>>
      %c8_i32_77 = arith.constant 8 : i32
      %c0_i32_78 = arith.constant 0 : i32
      %135 = arith.cmpi eq, %c8_i32_77, %c0_i32_78 : i32
      %c1_i32_79 = arith.constant 1 : i32
      %136 = arith.select %135, %c1_i32_79, %c8_i32_77 : i32
      %137 = arith.remsi %arg5, %136 : i32
      %c0_i32_80 = arith.constant 0 : i32
      %138 = arith.cmpi ne, %137, %c0_i32_80 : i32
      %c0_i32_81 = arith.constant 0 : i32
      %139 = arith.cmpi slt, %137, %c0_i32_81 : i32
      %c0_i32_82 = arith.constant 0 : i32
      %140 = arith.cmpi slt, %136, %c0_i32_82 : i32
      %141 = arith.xori %139, %140 : i1
      %142 = arith.andi %141, %138 : i1
      %143 = arith.addi %137, %136 : i32
      %144 = arith.select %142, %143, %137 : i32
      %c0_i32_83 = arith.constant 0 : i32
      %145 = tpu.memref_slice %arg2[%134, %c0_i32_83] : memref<64x128xf32, #tpu.memory_space<any>> -> memref<1x128xf32, #tpu.memory_space<any>>
      %c0_i32_84 = arith.constant 0 : i32
      %146 = tpu.memref_slice %arg3[%arg5, %c0_i32_84] : memref<16x128xf32, #tpu.memory_space<vmem>> -> memref<1x128xf32, #tpu.memory_space<vmem>>
      %147 = tpu.memref_slice %arg4[%144] : memref<8x!tpu.dma_semaphore, #tpu.memory_space<semaphore_mem>> -> memref<1x!tpu.dma_semaphore, #tpu.memory_space<semaphore_mem>>
      %148 = tpu.memref_squeeze %147 : memref<1x!tpu.dma_semaphore, #tpu.memory_space<semaphore_mem>> -> memref<!tpu.dma_semaphore, #tpu.memory_space<semaphore_mem>>
      tpu.enqueue_dma source(%145 : memref<1x128xf32, #tpu.memory_space<any>>) target(%146 : memref<1x128xf32, #tpu.memory_space<vmem>>) target_semaphore(%148 : memref<!tpu.dma_semaphore, #tpu.memory_space<semaphore_mem>>)
    }
    %c8_i32_34 = arith.constant 8 : i32
    %c8_i32_35 = arith.constant 8 : i32
    %58 = arith.addi %0, %c8_i32_35 : i32
    %59 = arith.index_cast %58 : i32 to index
    %60 = memref.load %arg1[%59] : memref<16xi32, #tpu.memory_space<smem>>
    %c0_i32_36 = arith.constant 0 : i32
    %c0_i32_37 = arith.constant 0 : i32
    %61 = tpu.memref_slice %arg2[%60, %c0_i32_37] : memref<64x128xf32, #tpu.memory_space<any>> -> memref<1x128xf32, #tpu.memory_space<any>>
    %c8_i32_38 = arith.constant 8 : i32
    %c0_i32_39 = arith.constant 0 : i32
    %62 = tpu.memref_slice %arg3[%c8_i32_38, %c0_i32_39] : memref<16x128xf32, #tpu.memory_space<vmem>> -> memref<1x128xf32, #tpu.memory_space<vmem>>
    %63 = tpu.memref_slice %arg4[%c0_i32_36] : memref<8x!tpu.dma_semaphore, #tpu.memory_space<semaphore_mem>> -> memref<1x!tpu.dma_semaphore, #tpu.memory_space<semaphore_mem>>
    %64 = tpu.memref_squeeze %63 : memref<1x!tpu.dma_semaphore, #tpu.memory_space<semaphore_mem>> -> memref<!tpu.dma_semaphore, #tpu.memory_space<semaphore_mem>>
    tpu.wait_dma2 semaphore(%64 : memref<!tpu.dma_semaphore, #tpu.memory_space<semaphore_mem>>) src(%61 : memref<1x128xf32, #tpu.memory_space<any>>) dst(%62 : memref<1x128xf32, #tpu.memory_space<vmem>>)
    %c9_i32 = arith.constant 9 : i32
    %65 = arith.addi %0, %c9_i32 : i32
    %66 = arith.index_cast %65 : i32 to index
    %67 = memref.load %arg1[%66] : memref<16xi32, #tpu.memory_space<smem>>
    %c1_i32_40 = arith.constant 1 : i32
    %c0_i32_41 = arith.constant 0 : i32
    %68 = tpu.memref_slice %arg2[%67, %c0_i32_41] : memref<64x128xf32, #tpu.memory_space<any>> -> memref<1x128xf32, #tpu.memory_space<any>>
    %c9_i32_42 = arith.constant 9 : i32
    %c0_i32_43 = arith.constant 0 : i32
    %69 = tpu.memref_slice %arg3[%c9_i32_42, %c0_i32_43] : memref<16x128xf32, #tpu.memory_space<vmem>> -> memref<1x128xf32, #tpu.memory_space<vmem>>
    %70 = tpu.memref_slice %arg4[%c1_i32_40] : memref<8x!tpu.dma_semaphore, #tpu.memory_space<semaphore_mem>> -> memref<1x!tpu.dma_semaphore, #tpu.memory_space<semaphore_mem>>
    %71 = tpu.memref_squeeze %70 : memref<1x!tpu.dma_semaphore, #tpu.memory_space<semaphore_mem>> -> memref<!tpu.dma_semaphore, #tpu.memory_space<semaphore_mem>>
    tpu.wait_dma2 semaphore(%71 : memref<!tpu.dma_semaphore, #tpu.memory_space<semaphore_mem>>) src(%68 : memref<1x128xf32, #tpu.memory_space<any>>) dst(%69 : memref<1x128xf32, #tpu.memory_space<vmem>>)
    %c10_i32 = arith.constant 10 : i32
    %72 = arith.addi %0, %c10_i32 : i32
    %73 = arith.index_cast %72 : i32 to index
    %74 = memref.load %arg1[%73] : memref<16xi32, #tpu.memory_space<smem>>
    %c2_i32_44 = arith.constant 2 : i32
    %c0_i32_45 = arith.constant 0 : i32
    %75 = tpu.memref_slice %arg2[%74, %c0_i32_45] : memref<64x128xf32, #tpu.memory_space<any>> -> memref<1x128xf32, #tpu.memory_space<any>>
    %c10_i32_46 = arith.constant 10 : i32
    %c0_i32_47 = arith.constant 0 : i32
    %76 = tpu.memref_slice %arg3[%c10_i32_46, %c0_i32_47] : memref<16x128xf32, #tpu.memory_space<vmem>> -> memref<1x128xf32, #tpu.memory_space<vmem>>
    %77 = tpu.memref_slice %arg4[%c2_i32_44] : memref<8x!tpu.dma_semaphore, #tpu.memory_space<semaphore_mem>> -> memref<1x!tpu.dma_semaphore, #tpu.memory_space<semaphore_mem>>
    %78 = tpu.memref_squeeze %77 : memref<1x!tpu.dma_semaphore, #tpu.memory_space<semaphore_mem>> -> memref<!tpu.dma_semaphore, #tpu.memory_space<semaphore_mem>>
    tpu.wait_dma2 semaphore(%78 : memref<!tpu.dma_semaphore, #tpu.memory_space<semaphore_mem>>) src(%75 : memref<1x128xf32, #tpu.memory_space<any>>) dst(%76 : memref<1x128xf32, #tpu.memory_space<vmem>>)
    %c11_i32 = arith.constant 11 : i32
    %79 = arith.addi %0, %c11_i32 : i32
    %80 = arith.index_cast %79 : i32 to index
    %81 = memref.load %arg1[%80] : memref<16xi32, #tpu.memory_space<smem>>
    %c3_i32_48 = arith.constant 3 : i32
    %c0_i32_49 = arith.constant 0 : i32
    %82 = tpu.memref_slice %arg2[%81, %c0_i32_49] : memref<64x128xf32, #tpu.memory_space<any>> -> memref<1x128xf32, #tpu.memory_space<any>>
    %c11_i32_50 = arith.constant 11 : i32
    %c0_i32_51 = arith.constant 0 : i32
    %83 = tpu.memref_slice %arg3[%c11_i32_50, %c0_i32_51] : memref<16x128xf32, #tpu.memory_space<vmem>> -> memref<1x128xf32, #tpu.memory_space<vmem>>
    %84 = tpu.memref_slice %arg4[%c3_i32_48] : memref<8x!tpu.dma_semaphore, #tpu.memory_space<semaphore_mem>> -> memref<1x!tpu.dma_semaphore, #tpu.memory_space<semaphore_mem>>
    %85 = tpu.memref_squeeze %84 : memref<1x!tpu.dma_semaphore, #tpu.memory_space<semaphore_mem>> -> memref<!tpu.dma_semaphore, #tpu.memory_space<semaphore_mem>>
    tpu.wait_dma2 semaphore(%85 : memref<!tpu.dma_semaphore, #tpu.memory_space<semaphore_mem>>) src(%82 : memref<1x128xf32, #tpu.memory_space<any>>) dst(%83 : memref<1x128xf32, #tpu.memory_space<vmem>>)
    %c12_i32 = arith.constant 12 : i32
    %86 = arith.addi %0, %c12_i32 : i32
    %87 = arith.index_cast %86 : i32 to index
    %88 = memref.load %arg1[%87] : memref<16xi32, #tpu.memory_space<smem>>
    %c4_i32_52 = arith.constant 4 : i32
    %c0_i32_53 = arith.constant 0 : i32
    %89 = tpu.memref_slice %arg2[%88, %c0_i32_53] : memref<64x128xf32, #tpu.memory_space<any>> -> memref<1x128xf32, #tpu.memory_space<any>>
    %c12_i32_54 = arith.constant 12 : i32
    %c0_i32_55 = arith.constant 0 : i32
    %90 = tpu.memref_slice %arg3[%c12_i32_54, %c0_i32_55] : memref<16x128xf32, #tpu.memory_space<vmem>> -> memref<1x128xf32, #tpu.memory_space<vmem>>
    %91 = tpu.memref_slice %arg4[%c4_i32_52] : memref<8x!tpu.dma_semaphore, #tpu.memory_space<semaphore_mem>> -> memref<1x!tpu.dma_semaphore, #tpu.memory_space<semaphore_mem>>
    %92 = tpu.memref_squeeze %91 : memref<1x!tpu.dma_semaphore, #tpu.memory_space<semaphore_mem>> -> memref<!tpu.dma_semaphore, #tpu.memory_space<semaphore_mem>>
    tpu.wait_dma2 semaphore(%92 : memref<!tpu.dma_semaphore, #tpu.memory_space<semaphore_mem>>) src(%89 : memref<1x128xf32, #tpu.memory_space<any>>) dst(%90 : memref<1x128xf32, #tpu.memory_space<vmem>>)
    %c13_i32 = arith.constant 13 : i32
    %93 = arith.addi %0, %c13_i32 : i32
    %94 = arith.index_cast %93 : i32 to index
    %95 = memref.load %arg1[%94] : memref<16xi32, #tpu.memory_space<smem>>
    %c5_i32_56 = arith.constant 5 : i32
    %c0_i32_57 = arith.constant 0 : i32
    %96 = tpu.memref_slice %arg2[%95, %c0_i32_57] : memref<64x128xf32, #tpu.memory_space<any>> -> memref<1x128xf32, #tpu.memory_space<any>>
    %c13_i32_58 = arith.constant 13 : i32
    %c0_i32_59 = arith.constant 0 : i32
    %97 = tpu.memref_slice %arg3[%c13_i32_58, %c0_i32_59] : memref<16x128xf32, #tpu.memory_space<vmem>> -> memref<1x128xf32, #tpu.memory_space<vmem>>
    %98 = tpu.memref_slice %arg4[%c5_i32_56] : memref<8x!tpu.dma_semaphore, #tpu.memory_space<semaphore_mem>> -> memref<1x!tpu.dma_semaphore, #tpu.memory_space<semaphore_mem>>
    %99 = tpu.memref_squeeze %98 : memref<1x!tpu.dma_semaphore, #tpu.memory_space<semaphore_mem>> -> memref<!tpu.dma_semaphore, #tpu.memory_space<semaphore_mem>>
    tpu.wait_dma2 semaphore(%99 : memref<!tpu.dma_semaphore, #tpu.memory_space<semaphore_mem>>) src(%96 : memref<1x128xf32, #tpu.memory_space<any>>) dst(%97 : memref<1x128xf32, #tpu.memory_space<vmem>>)
    %c14_i32 = arith.constant 14 : i32
    %100 = arith.addi %0, %c14_i32 : i32
    %101 = arith.index_cast %100 : i32 to index
    %102 = memref.load %arg1[%101] : memref<16xi32, #tpu.memory_space<smem>>
    %c6_i32_60 = arith.constant 6 : i32
    %c0_i32_61 = arith.constant 0 : i32
    %103 = tpu.memref_slice %arg2[%102, %c0_i32_61] : memref<64x128xf32, #tpu.memory_space<any>> -> memref<1x128xf32, #tpu.memory_space<any>>
    %c14_i32_62 = arith.constant 14 : i32
    %c0_i32_63 = arith.constant 0 : i32
    %104 = tpu.memref_slice %arg3[%c14_i32_62, %c0_i32_63] : memref<16x128xf32, #tpu.memory_space<vmem>> -> memref<1x128xf32, #tpu.memory_space<vmem>>
    %105 = tpu.memref_slice %arg4[%c6_i32_60] : memref<8x!tpu.dma_semaphore, #tpu.memory_space<semaphore_mem>> -> memref<1x!tpu.dma_semaphore, #tpu.memory_space<semaphore_mem>>
    %106 = tpu.memref_squeeze %105 : memref<1x!tpu.dma_semaphore, #tpu.memory_space<semaphore_mem>> -> memref<!tpu.dma_semaphore, #tpu.memory_space<semaphore_mem>>
    tpu.wait_dma2 semaphore(%106 : memref<!tpu.dma_semaphore, #tpu.memory_space<semaphore_mem>>) src(%103 : memref<1x128xf32, #tpu.memory_space<any>>) dst(%104 : memref<1x128xf32, #tpu.memory_space<vmem>>)
    %c15_i32 = arith.constant 15 : i32
    %107 = arith.addi %0, %c15_i32 : i32
    %108 = arith.index_cast %107 : i32 to index
    %109 = memref.load %arg1[%108] : memref<16xi32, #tpu.memory_space<smem>>
    %c7_i32_64 = arith.constant 7 : i32
    %c0_i32_65 = arith.constant 0 : i32
    %110 = tpu.memref_slice %arg2[%109, %c0_i32_65] : memref<64x128xf32, #tpu.memory_space<any>> -> memref<1x128xf32, #tpu.memory_space<any>>
    %c15_i32_66 = arith.constant 15 : i32
    %c0_i32_67 = arith.constant 0 : i32
    %111 = tpu.memref_slice %arg3[%c15_i32_66, %c0_i32_67] : memref<16x128xf32, #tpu.memory_space<vmem>> -> memref<1x128xf32, #tpu.memory_space<vmem>>
    %112 = tpu.memref_slice %arg4[%c7_i32_64] : memref<8x!tpu.dma_semaphore, #tpu.memory_space<semaphore_mem>> -> memref<1x!tpu.dma_semaphore, #tpu.memory_space<semaphore_mem>>
    %113 = tpu.memref_squeeze %112 : memref<1x!tpu.dma_semaphore, #tpu.memory_space<semaphore_mem>> -> memref<!tpu.dma_semaphore, #tpu.memory_space<semaphore_mem>>
    tpu.wait_dma2 semaphore(%113 : memref<!tpu.dma_semaphore, #tpu.memory_space<semaphore_mem>>) src(%110 : memref<1x128xf32, #tpu.memory_space<any>>) dst(%111 : memref<1x128xf32, #tpu.memory_space<vmem>>)
    return
  }
  func.func @transform_1(%arg0: i32, %arg1: memref<16xi32, #tpu.memory_space<smem>>) -> (i32, i32) {
    %c0_i32 = arith.constant 0 : i32
    %c0_i32_0 = arith.constant 0 : i32
    return %arg0, %c0_i32 : i32, i32
  }
}

</mosaic_0001>

<bundles_post_ra>
// kernel: tpu_custom_call.1
= control target key start
LH: loop header
LB: loop body
LE: loop exit
PB: predicated region body
PF: predicated region fallthrough
CT: control target
= control target key end

     0   :  { %s870_s0 = inlined_call_operand.hbm [shape: s32[16], index: 0, kind: input, shape index: {}]   ;;  %s871_s1 = inlined_call_operand.hbm [shape: f32[64,128], index: 1, kind: input, shape index: {}]   ;;  %s872_s2 = inlined_call_operand.hbm [shape: f32[16,128], index: 2, kind: output, shape index: {}]  }
   0x1   :  { %s380_s11 = scalar_lea.hbm %s870_s0, 16 }
   0x2   :  { %p381_p0 = scmp.ne.s32.totalorder %s870_s0, %s380_s11  ;;  %p384_p1 = scmp.lt.u32.totalorder %s380_s11, %s870_s0 }
   0x4   :  { %p386_p2 = pnand %p384_p1, %p381_p0 }
   0x6   :  { %389 = shalt.err (!%p386_p2)  }
   0x7   :  { %s658_s16 = smov [#allocation4]  }
   0x8   :  { %8 = dma.hbm_to_smem %s870_s0, 16, %s658_s16, [#allocation3] }
   0x9   :  { %632 = dma.done.wait [#allocation3], 16 }
   0xa   :  { %633 = vsyncadd [#allocation3], 4294967280 }
   0xb   :  { %10 = sfence }
   0xc   :  { %11 = vsyncpa [#allocation6], 0  ;;  %s13_s19 = sld [smem:[#allocation4]]  ;;  %s659_s20 = smov [#allocation5]  }
   0xd   :  { %s23_s21 = sshll.u32 %s659_s20, 4  ;;  %s696_s22 = sld [smem:[#allocation4 + $0x1]]  ;;  %s698_s21 = int_to_ptr.vmem [resolvable:$true] %s23_s21 }
   0xe   :  { %s660_s23 = smov [#allocation5 + $0x1]   ;;  %s700_s25 = sld [smem:[#allocation4 + $0x2]] }
   0xf   :  { %s40_s24 = sshll.u32 %s660_s23, 4  ;;  %s661_s26 = smov [#allocation5 + $0x2]   ;;  %s702_s24 = int_to_ptr.vmem [resolvable:$true] %s40_s24 }
  0x10   :  { %s57_s0 = sshll.u32 %s661_s26, 4  ;;  %s704_s27 = sld [smem:[#allocation4 + $0x3]]  ;;  %s706_s0 = int_to_ptr.vmem [resolvable:$true] %s57_s0 }
  0x11   :  { %s715_s8 = scalar_lea.hbm %s871_s1, 1024 }
  0x12   :  { %s330_s28 = sshll.u32 %s13_s19, 4 }
  0x13   :  { %s15_s3 = scalar_lea.hbm %s871_s1, %s330_s28  ;;  %s332_s4 = sshll.u32 %s696_s22, 4 }
  0x14   :  { %s390_s5 = scalar_lea.hbm %s15_s3, 16  ;;  %p393_p4 = scmp.lt.u32.totalorder %s15_s3, %s871_s1 }
  0x15   :  { %p391_p3 = scmp.ne.s32.totalorder %s15_s3, %s390_s5  ;;  %p394_p5 = scmp.lt.u32.totalorder %s715_s8, %s390_s5 }
  0x16   :  { %p396_p7 = scmp.lt.u32.totalorder %s390_s5, %s15_s3 }
  0x17   :  { %p395_p6 = por %p394_p5, %p393_p4 }
  0x19   :  { %p397_p8 = por %p396_p7, %p395_p6 }
  0x1b   :  { %p398_p9 = pnand %p397_p8, %p391_p3 }
  0x1d   :  { %401 = shalt.err (!%p398_p9)  }
  0x1e   :  { %s402_s11 = scalar_lea.vmem %s698_s21, 16  ;;  %s724_s12 = scalar_lea.vmem %s698_s21, 256 }
  0x1f   :  { %p403_p10 = scmp.ne.s32.totalorder %s698_s21, %s402_s11  ;;  %p407_p11 = scmp.lt.s32.totalorder %s698_s21, %s698_s21 }
  0x20   :  { %p408_p12 = scmp.lt.s32.totalorder %s724_s12, %s402_s11 }
  0x22   :  { %p409_p13 = por %p408_p12, %p407_p11 }
  0x24   :  { %p410_p0 = pnand %p409_p13, %p403_p10 }
  0x26   :  { %413 = shalt.err (!%p410_p0)  }
  0x27   :  { %26 = dma.hbm_to_vmem [thread:$0]  %s15_s3, 16, %s698_s21, [#allocation2] }
  0x28   :  { %s30_s15 = scalar_lea.hbm %s871_s1, %s332_s4  ;;  %s334_s16 = sshll.u32 %s700_s25, 4 }
  0x29   :  { %s414_s17 = scalar_lea.hbm %s30_s15, 16  ;;  %p417_p2 = scmp.lt.u32.totalorder %s30_s15, %s871_s1 }
  0x2a   :  { %p415_p1 = scmp.ne.s32.totalorder %s30_s15, %s414_s17  ;;  %p418_p3 = scmp.lt.u32.totalorder %s715_s8, %s414_s17 }
  0x2b   :  { %p420_p5 = scmp.lt.u32.totalorder %s414_s17, %s30_s15 }
  0x2c   :  { %p419_p4 = por %p418_p3, %p417_p2 }
  0x2e   :  { %p421_p6 = por %p420_p5, %p419_p4 }
  0x30   :  { %p422_p7 = pnand %p421_p6, %p415_p1 }
  0x32   :  { %425 = shalt.err (!%p422_p7)  }
  0x33   :  { %s426_s20 = scalar_lea.vmem %s702_s24, 16  ;;  %p431_p9 = scmp.lt.s32.totalorder %s702_s24, %s698_s21 }
  0x34   :  { %p427_p8 = scmp.ne.s32.totalorder %s702_s24, %s426_s20  ;;  %p432_p10 = scmp.lt.s32.totalorder %s724_s12, %s426_s20 }
  0x36   :  { %p433_p12 = por %p432_p10, %p431_p9 }
  0x38   :  { %p434_p13 = pnand %p433_p12, %p427_p8 }
  0x3a   :  { %437 = shalt.err (!%p434_p13)  }
  0x3b   :  { %43 = dma.hbm_to_vmem [thread:$0]  %s30_s15, 16, %s702_s24, [#allocation2 + $0x1] }
  0x3c   :  { %s47_s25 = scalar_lea.hbm %s871_s1, %s334_s16  ;;  %s336_s26 = sshll.u32 %s704_s27, 4 }
  0x3d   :  { %s438_s28 = scalar_lea.hbm %s47_s25, 16  ;;  %p441_p1 = scmp.lt.u32.totalorder %s47_s25, %s871_s1 }
  0x3e   :  { %p439_p0 = scmp.ne.s32.totalorder %s47_s25, %s438_s28  ;;  %p442_p2 = scmp.lt.u32.totalorder %s715_s8, %s438_s28 }
  0x3f   :  { %p444_p4 = scmp.lt.u32.totalorder %s438_s28, %s47_s25 }
  0x40   :  { %p443_p3 = por %p442_p2, %p441_p1 }
  0x42   :  { %p445_p5 = por %p444_p4, %p443_p3 }
  0x44   :  { %p446_p6 = pnand %p445_p5, %p439_p0 }
  0x46   :  { %449 = shalt.err (!%p446_p6)  }
  0x47   :  { %s450_s24 = scalar_lea.vmem %s706_s0, 16  ;;  %p455_p8 = scmp.lt.s32.totalorder %s706_s0, %s698_s21 }
  0x48   :  { %p451_p7 = scmp.ne.s32.totalorder %s706_s0, %s450_s24  ;;  %p456_p9 = scmp.lt.s32.totalorder %s724_s12, %s450_s24 }
  0x4a   :  { %p457_p10 = por %p456_p9, %p455_p8 }
  0x4c   :  { %p458_p12 = pnand %p457_p10, %p451_p7 }
  0x4e   :  { %461 = shalt.err (!%p458_p12)  }
  0x4f   :  { %60 = dma.hbm_to_vmem [thread:$0]  %s47_s25, 16, %s706_s0, [#allocation2 + $0x2] }
  0x50   :  { %s64_s4 = scalar_lea.hbm %s871_s1, %s336_s26  ;;  %s662_s5 = smov [#allocation5 + $0x3]  }
  0x51   :  { %s74_s6 = sshll.u32 %s662_s5, 4  ;;  %s764_s7 = sld [smem:[#allocation4 + $0x4]]  ;;  %s75_s6 = int_to_ptr.vmem [resolvable:$true] %s74_s6 }
  0x52   :  { %s462_s9 = scalar_lea.hbm %s64_s4, 16  ;;  %p465_p0 = scmp.lt.u32.totalorder %s64_s4, %s871_s1 }
  0x53   :  { %p463_p13 = scmp.ne.s32.totalorder %s64_s4, %s462_s9  ;;  %p466_p1 = scmp.lt.u32.totalorder %s715_s8, %s462_s9 }
  0x54   :  { %p468_p3 = scmp.lt.u32.totalorder %s462_s9, %s64_s4 }
  0x55   :  { %p467_p2 = por %p466_p1, %p465_p0 }
  0x57   :  { %p469_p4 = por %p468_p3, %p467_p2 }
  0x59   :  { %p470_p5 = pnand %p469_p4, %p463_p13 }
  0x5b   :  { %473 = shalt.err (!%p470_p5)  }
  0x5c   :  { %s474_s0 = scalar_lea.vmem %s75_s6, 16  ;;  %p479_p7 = scmp.lt.s32.totalorder %s75_s6, %s698_s21 }
  0x5d   :  { %p475_p6 = scmp.ne.s32.totalorder %s75_s6, %s474_s0  ;;  %p480_p8 = scmp.lt.s32.totalorder %s724_s12, %s474_s0 }
  0x5f   :  { %p481_p9 = por %p480_p8, %p479_p7 }
  0x61   :  { %p482_p10 = pnand %p481_p9, %p475_p6 }
  0x63   :  { %485 = shalt.err (!%p482_p10)  }
  0x64   :  { %77 = dma.hbm_to_vmem [thread:$0]  %s64_s4, 16, %s75_s6, [#allocation2 + $0x3] }
  0x65   :  { %s663_s13 = smov [#allocation5 + $0x4]   ;;  %s772_s15 = sld [smem:[#allocation4 + $0x5]] }
  0x66   :  { %s91_s14 = sshll.u32 %s663_s13, 4  ;;  %s664_s16 = smov [#allocation5 + $0x5]   ;;  %s92_s14 = int_to_ptr.vmem [resolvable:$true] %s91_s14 }
  0x67   :  { %s108_s17 = sshll.u32 %s664_s16, 4  ;;  %s774_s18 = sld [smem:[#allocation4 + $0x6]]  ;;  %s777_s17 = int_to_ptr.vmem [resolvable:$true] %s108_s17 }
  0x68   :  { %s338_s19 = sshll.u32 %s764_s7, 4 }
  0x69   :  { %s81_s23 = scalar_lea.hbm %s871_s1, %s338_s19 }
  0x6a   :  { %s486_s25 = scalar_lea.hbm %s81_s23, 16  ;;  %p489_p13 = scmp.lt.u32.totalorder %s81_s23, %s871_s1 }
  0x6b   :  { %p487_p12 = scmp.ne.s32.totalorder %s81_s23, %s486_s25  ;;  %p490_p0 = scmp.lt.u32.totalorder %s715_s8, %s486_s25 }
  0x6c   :  { %p492_p2 = scmp.lt.u32.totalorder %s486_s25, %s81_s23 }
  0x6d   :  { %p491_p1 = por %p490_p0, %p489_p13 }
  0x6f   :  { %p493_p3 = por %p492_p2, %p491_p1 }
  0x71   :  { %p494_p4 = pnand %p493_p3, %p487_p12 }
  0x73   :  { %497 = shalt.err (!%p494_p4)  }
  0x74   :  { %s498_s29 = scalar_lea.vmem %s92_s14, 16  ;;  %p503_p6 = scmp.lt.s32.totalorder %s92_s14, %s698_s21 }
  0x75   :  { %p499_p5 = scmp.ne.s32.totalorder %s92_s14, %s498_s29  ;;  %p504_p7 = scmp.lt.s32.totalorder %s724_s12, %s498_s29 }
  0x77   :  { %p505_p8 = por %p504_p7, %p503_p6 }
  0x79   :  { %p506_p9 = pnand %p505_p8, %p499_p5 }
  0x7b   :  { %509 = shalt.err (!%p506_p9)  }
  0x7c   :  { %94 = dma.hbm_to_vmem [thread:$0]  %s81_s23, 16, %s92_s14, [#allocation2 + $0x4] }
  0x7d   :  { %s340_s30 = sshll.u32 %s772_s15, 4  ;;  %s665_s24 = smov [#allocation5 + $0x6]  }
  0x7e   :  { %s125_s27 = sshll.u32 %s665_s24, 4  ;;  %s98_s5 = scalar_lea.hbm %s871_s1, %s340_s30  ;;  %s792_s27 = int_to_ptr.vmem [resolvable:$true] %s125_s27 }
  0x7f   :  { %s510_s6 = scalar_lea.hbm %s98_s5, 16  ;;  %p513_p12 = scmp.lt.u32.totalorder %s98_s5, %s871_s1 }
  0x80   :  { %p511_p10 = scmp.ne.s32.totalorder %s98_s5, %s510_s6  ;;  %p514_p13 = scmp.lt.u32.totalorder %s715_s8, %s510_s6 }
  0x81   :  { %p516_p1 = scmp.lt.u32.totalorder %s510_s6, %s98_s5 }
  0x82   :  { %p515_p0 = por %p514_p13, %p513_p12 }
  0x84   :  { %p517_p2 = por %p516_p1, %p515_p0 }
  0x86   :  { %p518_p3 = pnand %p517_p2, %p511_p10 }
  0x88   :  { %521 = shalt.err (!%p518_p3)  }
  0x89   :  { %s522_s10 = scalar_lea.vmem %s777_s17, 16  ;;  %p527_p5 = scmp.lt.s32.totalorder %s777_s17, %s698_s21 }
  0x8a   :  { %p523_p4 = scmp.ne.s32.totalorder %s777_s17, %s522_s10  ;;  %p528_p6 = scmp.lt.s32.totalorder %s724_s12, %s522_s10 }
  0x8c   :  { %p529_p7 = por %p528_p6, %p527_p5 }
  0x8e   :  { %p530_p8 = pnand %p529_p7, %p523_p4 }
  0x90   :  { %533 = shalt.err (!%p530_p8)  }
  0x91   :  { %111 = dma.hbm_to_vmem [thread:$0]  %s98_s5, 16, %s777_s17, [#allocation2 + $0x5] }
  0x92   :  { %s342_s11 = sshll.u32 %s774_s18, 4  ;;  %s343_s0 = sld [smem:[#allocation4 + $0x7]] }
  0x93   :  { %s115_s15 = scalar_lea.hbm %s871_s1, %s342_s11 }
  0x94   :  { %s534_s16 = scalar_lea.hbm %s115_s15, 16  ;;  %p537_p10 = scmp.lt.u32.totalorder %s115_s15, %s871_s1 }
  0x95   :  { %p535_p9 = scmp.ne.s32.totalorder %s115_s15, %s534_s16  ;;  %p538_p12 = scmp.lt.u32.totalorder %s715_s8, %s534_s16 }
  0x96   :  { %p540_p0 = scmp.lt.u32.totalorder %s534_s16, %s115_s15 }
  0x97   :  { %p539_p13 = por %p538_p12, %p537_p10 }
  0x99   :  { %p541_p1 = por %p540_p0, %p539_p13 }
  0x9b   :  { %p542_p2 = pnand %p541_p1, %p535_p9 }
  0x9d   :  { %545 = shalt.err (!%p542_p2)  }
  0x9e   :  { %s546_s17 = scalar_lea.vmem %s792_s27, 16  ;;  %p551_p4 = scmp.lt.s32.totalorder %s792_s27, %s698_s21 }
  0x9f   :  { %p547_p3 = scmp.ne.s32.totalorder %s792_s27, %s546_s17  ;;  %p552_p5 = scmp.lt.s32.totalorder %s724_s12, %s546_s17 }
  0xa1   :  { %p553_p6 = por %p552_p5, %p551_p4 }
  0xa3   :  { %p554_p7 = pnand %p553_p6, %p547_p3 }
  0xa5   :  { %557 = shalt.err (!%p554_p7)  }
  0xa6   :  { %128 = dma.hbm_to_vmem [thread:$0]  %s115_s15, 16, %s792_s27, [#allocation2 + $0x6] }
  0xa7   :  { %s666_s18 = smov [#allocation5 + $0x7]   ;;  %s344_s23 = sshll.u32 %s343_s0, 4 }
  0xa8   :  { %s142_s22 = sshll.u32 %s666_s18, 4  ;;  %s132_s28 = scalar_lea.hbm %s871_s1, %s344_s23  ;;  %s143_s22 = int_to_ptr.vmem [resolvable:$true] %s142_s22 }
  0xa9   :  { %s558_s29 = scalar_lea.hbm %s132_s28, 16  ;;  %p561_p9 = scmp.lt.u32.totalorder %s132_s28, %s871_s1 }
  0xaa   :  { %p559_p8 = scmp.ne.s32.totalorder %s132_s28, %s558_s29  ;;  %p562_p10 = scmp.lt.u32.totalorder %s715_s8, %s558_s29 }
  0xab   :  { %p564_p13 = scmp.lt.u32.totalorder %s558_s29, %s132_s28 }
  0xac   :  { %p563_p12 = por %p562_p10, %p561_p9 }
  0xae   :  { %p565_p0 = por %p564_p13, %p563_p12 }
  0xb0   :  { %p566_p1 = pnand %p565_p0, %p559_p8 }
  0xb2   :  { %569 = shalt.err (!%p566_p1)  }
  0xb3   :  { %s570_s27 = scalar_lea.vmem %s143_s22, 16  ;;  %p575_p3 = scmp.lt.s32.totalorder %s143_s22, %s698_s21 }
  0xb4   :  { %p571_p2 = scmp.ne.s32.totalorder %s143_s22, %s570_s27  ;;  %p576_p4 = scmp.lt.s32.totalorder %s724_s12, %s570_s27 }
  0xb6   :  { %p577_p5 = por %p576_p4, %p575_p3 }
  0xb8   :  { %p578_p6 = pnand %p577_p5, %p571_p2 }
  0xba   :  { %581 = shalt.err (!%p578_p6)  }
  0xbb   :  { %145 = dma.hbm_to_vmem [thread:$0]  %s132_s28, 16, %s143_s22, [#allocation2 + $0x7] }
  0xbc   :  { %s827_s3 = smov 8  }
  0xbd LB: > { %s345_s4 = sadd.s32 4294967288, %s656_s3  ;;  %s656_s3 = sphi %s827_s3, %s151_s3  }
  0xbe   : > { %p155_p7 = scmp.lt.s32.totalorder %s345_s4, 0  ;;  %s156_s5 = ssub.s32 0, %s345_s4 }
  0xbf   : > { %s346_s6 = smin.u32 %s345_s4, %s156_s5 }
  0xc0   : > { %s158_s7 = sand.u32 7, %s346_s6  }
  0xc1   : > { %s159_s9 = ssub.s32 0, %s158_s7 }
  0xc2   : > { %s874_s9 = smov (!%p155_p7, %s159_s9), %s158_s7 }
  0xc3   : > { %p348_p8 = scmp.lt.s32.totalorder %s874_s9, 0  ;;  %s165_s10 = sadd.s32 8, %s874_s9 }
  0xc5   : > { %s876_s10 = smov (!%p348_p8, %s165_s10), %s874_s9 }
  0xc6   : > { %s167_s11 = scalar_lea.sflag [#allocation2], %s876_s10 }
  0xc7   : > { %634 = dma.done.wait %s167_s11, 16 }
  0xc8   : > { %635 = vsyncadd %s167_s11, 4294967280  ;;  %p173_p9 = scmp.lt.s32.totalorder %s656_s3, 0  ;;  %s174_s0 = ssub.s32 0, %s656_s3 }
  0xc9   : > { %s172_s13 = sld [smem:[#allocation4 + %s656_s3]]  ;;  %s349_s14 = smin.u32 %s656_s3, %s174_s0 }
  0xca   : > { %s176_s15 = sand.u32 7, %s349_s14   ;;  %s187_s19 = scalar_lea.vmem [#allocation5], %s656_s3 }
  0xcb   : > { %s177_s16 = ssub.s32 0, %s176_s15  ;;  %s196_s20 = sshll.u32 %s187_s19, 4  ;;  %s197_s20 = int_to_ptr.vmem [resolvable:$true] %s196_s20 }
  0xcc   : > { %s878_s16 = smov (!%p173_p9, %s177_s16), %s176_s15 }
  0xcd   : > { %p351_p10 = scmp.lt.s32.totalorder %s878_s16, 0  ;;  %s183_s17 = sadd.s32 8, %s878_s16 }
  0xcf   : > { %s352_s18 = sshll.u32 %s172_s13, 4  ;;  %s880_s17 = smov (!%p351_p10, %s183_s17), %s878_s16 }
  0xd0   : > { %s186_s25 = scalar_lea.hbm %s871_s1, %s352_s18  ;;  %s188_s26 = scalar_lea.sflag [#allocation2], %s880_s17 }
  0xd1   : > { %s582_s28 = scalar_lea.hbm %s186_s25, 16  ;;  %p585_p13 = scmp.lt.u32.totalorder %s186_s25, %s871_s1 }
  0xd2   : > { %p583_p12 = scmp.ne.s32.totalorder %s186_s25, %s582_s28  ;;  %p586_p0 = scmp.lt.u32.totalorder %s715_s8, %s582_s28 }
  0xd3   : > { %p588_p2 = scmp.lt.u32.totalorder %s582_s28, %s186_s25 }
  0xd4   : > { %p587_p1 = por %p586_p0, %p585_p13 }
  0xd6   : > { %p589_p3 = por %p588_p2, %p587_p1 }
  0xd8   : > { %p590_p4 = pnand %p589_p3, %p583_p12 }
  0xda   : > { %593 = shalt.err (!%p590_p4)  }
  0xdb   : > { %s594_s24 = scalar_lea.vmem %s197_s20, 16  ;;  %p599_p6 = scmp.lt.s32.totalorder %s197_s20, %s698_s21 }
  0xdc   : > { %p595_p5 = scmp.ne.s32.totalorder %s197_s20, %s594_s24  ;;  %p600_p7 = scmp.lt.s32.totalorder %s724_s12, %s594_s24 }
  0xde   : > { %p601_p8 = por %p600_p7, %p599_p6 }
  0xe0   : > { %p602_p9 = pnand %p601_p8, %p595_p5 }
  0xe2   : > { %605 = shalt.err (!%p602_p9)  }
  0xe3   : > { %199 = dma.hbm_to_vmem [thread:$0]  %s186_s25, 16, %s197_s20, %s188_s26 }
  0xe4   : > { %s151_s3 = sadd.s32 1, %s656_s3  }
  0xe5   : > { %p148_p10 = scmp.ge.s32.totalorder %s151_s3, 16  }
  0xe7   :  { %150 = sbr.rel (!%p148_p10) target bundleno = 189 (0xbd), region = 96 }
  0xee   :  { %636 = dma.done.wait [#allocation2], 16 }
  0xef   :  { %637 = vsyncadd [#allocation2], 4294967280 }
  0xf0   :  { %638 = dma.done.wait [#allocation2 + $0x1], 16 }
  0xf1   :  { %639 = vsyncadd [#allocation2 + $0x1], 4294967280 }
  0xf2   :  { %640 = dma.done.wait [#allocation2 + $0x2], 16 }
  0xf3   :  { %641 = vsyncadd [#allocation2 + $0x2], 4294967280 }
  0xf4   :  { %642 = dma.done.wait [#allocation2 + $0x3], 16 }
  0xf5   :  { %643 = vsyncadd [#allocation2 + $0x3], 4294967280 }
  0xf6   :  { %644 = dma.done.wait [#allocation2 + $0x4], 16 }
  0xf7   :  { %645 = vsyncadd [#allocation2 + $0x4], 4294967280 }
  0xf8   :  { %646 = dma.done.wait [#allocation2 + $0x5], 16 }
  0xf9   :  { %647 = vsyncadd [#allocation2 + $0x5], 4294967280 }
  0xfa   :  { %648 = dma.done.wait [#allocation2 + $0x6], 16 }
  0xfb   :  { %649 = vsyncadd [#allocation2 + $0x6], 4294967280 }
  0xfc   :  { %650 = dma.done.wait [#allocation2 + $0x7], 16 }
  0xfd   :  { %651 = vsyncadd [#allocation2 + $0x7], 4294967280  ;;  %p607_p12 = scmp.ne.s32.totalorder %s698_s21, %s724_s12  ;;  %p612_p13 = scmp.lt.s32.totalorder %s724_s12, %s724_s12 }
  0xff   :  { %p613_p0 = por %p612_p13, %p407_p11 }
 0x101   :  { %p614_p1 = pnand %p613_p0, %p607_p12 }
 0x103   :  { %617 = shalt.err (!%p614_p1)
}
 0x104   :  { %s618_s27 = scalar_lea.hbm %s872_s2, 256 }
 0x105   :  { %p619_p2 = scmp.ne.s32.totalorder %s872_s2, %s618_s27  ;;  %p622_p3 = scmp.lt.u32.totalorder %s618_s27, %s872_s2 }
 0x107   :  { %p624_p4 = pnand %p622_p3, %p619_p2 }
 0x109   :  { %627 = shalt.err (!%p624_p4)
}
 0x10a   :  { %s667_s7 = smov 128   ;;  %s668_s12 = smov 8  }
 0x10b   :  { %244 = dma.vmem_to_hbm [thread:$0]  %s698_s21, 256, %s872_s2, [#allocation6], %s667_s7, %s667_s7, %s668_s12  }
 0x10c   :  { %652 = dma.done.wait [#allocation6], 256  }
 0x10d   :  { %653 = vsyncadd [#allocation6], 4294967040 }
 0x10e   :  { %248 = vsyncpa [#allocation6], 1 }
 0x10f   :  { %249 = vsyncmov [#allocation2] }
 0x112   :  { %s250_s11 = vpop.sfrf %249 }
 0x113   :  { %p353_p11 = scmp.ne.s32.totalorder %s250_s11, 0 }
 0x115   :  { %254 = shalt.err (%p353_p11)  }
 0x116   :  { %256 = vsyncmov [#allocation2 + $0x1] }
 0x119   :  { %s257_s0 = vpop.sfrf %256 }
 0x11a   :  { %p354_p5 = scmp.ne.s32.totalorder %s257_s0, 0 }
 0x11c   :  { %261 = shalt.err (%p354_p5)  }
 0x11d   :  { %263 = vsyncmov [#allocation2 + $0x2] }
 0x120   :  { %s264_s13 = vpop.sfrf %263 }
 0x121   :  { %p355_p6 = scmp.ne.s32.totalorder %s264_s13, 0 }
 0x123   :  { %268 = shalt.err (%p355_p6)  }
 0x124   :  { %270 = vsyncmov [#allocation2 + $0x3] }
 0x127   :  { %s271_s14 = vpop.sfrf %270 }
 0x128   :  { %p356_p7 = scmp.ne.s32.totalorder %s271_s14, 0 }
 0x12a   :  { %275 = shalt.err (%p356_p7)  }
 0x12b   :  { %277 = vsyncmov [#allocation2 + $0x4] }
 0x12e   :  { %s278_s2 = vpop.sfrf %277 }
 0x12f   :  { %p357_p8 = scmp.ne.s32.totalorder %s278_s2, 0 }
 0x131   :  { %282 = shalt.err (%p357_p8)  }
 0x132   :  { %284 = vsyncmov [#allocation2 + $0x5] }
 0x135   :  { %s285_s21 = vpop.sfrf %284 }
 0x136   :  { %p358_p9 = scmp.ne.s32.totalorder %s285_s21, 0 }
 0x138   :  { %289 = shalt.err (%p358_p9)  }
 0x139   :  { %291 = vsyncmov [#allocation2 + $0x6] }
 0x13c   :  { %s292_s15 = vpop.sfrf %291 }
 0x13d   :  { %p359_p10 = scmp.ne.s32.totalorder %s292_s15, 0 }
 0x13f   :  { %296 = shalt.err (%p359_p10)  }
 0x140   :  { %298 = vsyncmov [#allocation2 + $0x7] }
 0x143   :  { %s299_s16 = vpop.sfrf %298 }
 0x144   :  { %p360_p12 = scmp.ne.s32.totalorder %s299_s16, 0 }
 0x146   :  { %303 = shalt.err (%p360_p12)  }

</bundles_post_ra>
